<compile_context>
chip_gen: v7x
topology: tpu7x:2x2x1
jax: 0.10.0
libtpu: 0.0.40
codegen_flags: <defaults>
</compile_context>

<pallas_src>
import jax
import jax.numpy as jnp
from jax.experimental import pallas as pl
from jax.experimental.pallas import tpu as pltpu


def _copy_kernel(x_ref, o_ref):
    # Lane-dense identity copy of the current VMEM tile (no relayout, no XLU).
    o_ref[...] = x_ref[...]


def _pick_lane_width(total):
    """Largest multiple-of-128 width (capped) that evenly divides `total`."""
    for cand in (32768, 16384, 8192, 4096, 2048, 1024, 512, 384, 256, 128):
        if total % cand == 0:
            return cand
    return 0  # no lane-dense presentation possible


def _pick_row_tile(rows, width, itemsize, budget=4 * 1024 * 1024):
    """Largest row tile that divides `rows`, is a multiple of 8, and keeps a
    single (tile x width) buffer <= `budget` bytes (so 2 arrays x 2 pipeline
    buffers stay well under the scoped-VMEM limit on every generation)."""
    for cand in (4096, 2048, 1024, 512, 256, 128, 64, 32, 16, 8):
        if cand <= rows and rows % cand == 0 and cand * width * itemsize <= budget:
            return cand
    return rows  # single block (full-extent block shape is always legal)


def _lane_dense_copy(x2):
    """Tiled Pallas identity copy of a 2-D array (last dim kept whole)."""
    rows, width = x2.shape
    itemsize = jnp.dtype(x2.dtype).itemsize
    tr = _pick_row_tile(rows, width, itemsize)
    grid = (rows // tr,)
    return pl.pallas_call(
        _copy_kernel,
        out_shape=jax.ShapeDtypeStruct((rows, width), x2.dtype),
        grid=grid,
        in_specs=[pl.BlockSpec((tr, width), lambda i: (i, 0))],
        out_specs=pl.BlockSpec((tr, width), lambda i: (i, 0)),
        compiler_params=pltpu.CompilerParams(
            dimension_semantics=("parallel",)),
    )(x2)


def squeeze_channels(x, use_pallas=True):
    """Equivalent of torch `x.squeeze(2)` for a (B, C, 1) input."""
    assert x.ndim == 3 and x.shape[2] == 1, "SqueezeChannels expects (B, C, 1)"
    B, C, _ = x.shape

    # The actual squeeze: zero-cost metadata op in the wrapper.
    x2 = jnp.squeeze(x, axis=2)  # (B, C)

    if not use_pallas:
        return x2

    total = B * C
    width = _pick_lane_width(total)
    if width > 0:
        # Lane-dense presentation: full-width unmasked stores in the kernel.
        rows = total // width
        y = _lane_dense_copy(x2.reshape(rows, width))
        return y.reshape(B, C)

    # TODO(synk): B*C not a multiple of 128 -> single-block copy with masked
    # stores; the pure-reshape path (use_pallas=False) is optimal here.
    return _lane_dense_copy(x2)


if __name__ == "__main__":
    key = jax.random.PRNGKey(0)

    # Small shape matching what AdaptiveMaxPool1d(1) feeds SqueezeChannels.
    B, C = 2, 4
    x = jax.random.normal(key, (B, C, 1), dtype=jnp.float32)

    y = jax.block_until_ready(squeeze_channels(x, use_pallas=True))
    assert y.shape == (B, C), y.shape
    assert y.dtype == x.dtype
    assert jnp.allclose(y, x[:, :, 0]), "squeeze result mismatch"

    # Zero-cost reference path must agree.
    y_ref = jax.block_until_ready(squeeze_channels(x, use_pallas=False))
    assert jnp.array_equal(y, y_ref)

    # Also exercise the lane-dense tiled path (B*C multiple of 128).
    key2 = jax.random.PRNGKey(0)
    x_big = jax.random.normal(key2, (16, 320, 1), dtype=jnp.bfloat16)
    y_big = jax.block_until_ready(squeeze_channels(x_big, use_pallas=True))
    assert y_big.shape == (16, 320)
    assert jnp.array_equal(y_big, x_big[:, :, 0])

    print("KERNEL_OK")
</pallas_src>

<mosaic_0001>
module attributes {stable_mosaic.version = 11 : i64} {
  func.func @_copy_kernel(%arg0: i32, %arg1: memref<2x4xf32, #tpu.memory_space<vmem>>, %arg2: memref<2x4xf32, #tpu.memory_space<vmem>>) attributes {dimension_semantics = [#tpu.dimension_semantics<parallel>], iteration_bounds = array<i64: 1>, scalar_prefetch = 0 : i64, scratch_operands = 0 : i64, tpu.core_type = #tpu.core_type<tc>, window_params = [{transform_indices = @transform_0, window_bounds = array<i64: 2, 4>}, {transform_indices = @transform_1, window_bounds = array<i64: 2, 4>}]} {
    %c0 = arith.constant 0 : index
    %c0_0 = arith.constant 0 : index
    %0 = vector.load %arg1[%c0, %c0_0] : memref<2x4xf32, #tpu.memory_space<vmem>>, vector<2x4xf32>
    %c0_1 = arith.constant 0 : index
    %c0_2 = arith.constant 0 : index
    %1 = vector.load %arg2[%c0_1, %c0_2] : memref<2x4xf32, #tpu.memory_space<vmem>>, vector<2x4xf32>
    tpu.vector_store %arg2[%c0_1, %c0_2], %0 {strides = array<i32>} : memref<2x4xf32, #tpu.memory_space<vmem>>, vector<2x4xf32>,
    return
  }
  func.func @transform_0(%arg0: i32) -> (i32, i32) {
    %c0_i32 = arith.constant 0 : i32
    %c0_i32_0 = arith.constant 0 : i32
    return %arg0, %c0_i32 : i32, i32
  }
  func.func @transform_1(%arg0: i32) -> (i32, i32) {
    %c0_i32 = arith.constant 0 : i32
    %c0_i32_0 = arith.constant 0 : i32
    return %arg0, %c0_i32 : i32, i32
  }
}

</mosaic_0001>

<bundles_post_ra>
// kernel: tpu_custom_call.1
= control target key start
LH: loop header
LB: loop body
LE: loop exit
PB: predicated region body
PF: predicated region fallthrough
CT: control target
= control target key end

     0   :  { %6 = vsyncpa [#allocation3], 0  ;;  %s125_s0 = inlined_call_operand.hbm [shape: f32[2,4], index: 0, kind: input, shape index: {}]   ;;  %s126_s1 = inlined_call_operand.hbm [shape: f32[2,4], index: 1, kind: output, shape index: {}]  }
   0x1   :  { %7 = vsyncpa [#allocation4], 0  ;;  %s89_s6 = smov [#allocation2]   ;;  %s41_s10 = scalar_lea.hbm %s125_s0, 32 }
   0x2   :  { %s14_s7 = sshll.u32 %s89_s6, 4  ;;  %p42_p0 = scmp.ne.s32.totalorder %s125_s0, %s41_s10  ;;  %s15_s7 = int_to_ptr.vmem [resolvable:$true] %s14_s7 }
   0x3   :  { %p45_p1 = scmp.lt.u32.totalorder %s41_s10, %s125_s0 }
   0x5   :  { %p47_p2 = pnand %p45_p1, %p42_p0 }
   0x7   :  { %50 = shalt.err (!%p47_p2)
}
   0x8   :  { %s51_s15 = scalar_lea.vmem %s15_s7, 32  ;;  %p56_p4 = scmp.lt.s32.totalorder %s15_s7, %s15_s7 }
   0x9   :  { %p52_p3 = scmp.ne.s32.totalorder %s15_s7, %s51_s15  ;;  %p57_p5 = scmp.lt.s32.totalorder %s51_s15, %s51_s15 }
   0xb   :  { %p58_p6 = por %p57_p5, %p56_p4 }
   0xd   :  { %p59_p7 = pnand %p58_p6, %p52_p3 }
   0xf   :  { %62 = shalt.err (!%p59_p7)
}
  0x10   :  { %17 = dma.hbm_to_vmem [thread:$0]  %s125_s0, 32, %s15_s7, [#allocation3]  }
  0x11   :  { %85 = dma.done.wait [#allocation3], 32  }
  0x12   :  { %86 = vsyncadd [#allocation3], 4294967264  ;;  %s90_s18 = smov [#allocation5]   ;;  %vm22_vm0 = vcmask 25600   ;;  %v21_v0 = vld [vmem:[#allocation2] sm:$0x3] }
  0x13   :  { %s30_s19 = sshll.u32 %s90_s18, 4  ;;  %23 = vst.msk [vmem:[#allocation5] sm:$0x3] %vm22_vm0, %v21_v0  ;;  %s31_s19 = int_to_ptr.vmem [resolvable:$true] %s30_s19 }
  0x14   :  { %s63_s20 = scalar_lea.vmem %s31_s19, 32  ;;  %p68_p9 = scmp.lt.s32.totalorder %s31_s19, %s31_s19 }
  0x15   :  { %p64_p8 = scmp.ne.s32.totalorder %s31_s19, %s63_s20  ;;  %p69_p10 = scmp.lt.s32.totalorder %s63_s20, %s63_s20 }
  0x17   :  { %p70_p11 = por %p69_p10, %p68_p9 }
  0x19   :  { %p71_p12 = pnand %p70_p11, %p64_p8 }
  0x1b   :  { %74 = shalt.err (!%p71_p12)
}
  0x1c   :  { %s75_s23 = scalar_lea.hbm %s126_s1, 32 }
  0x1d   :  { %p76_p13 = scmp.ne.s32.totalorder %s126_s1, %s75_s23  ;;  %p79_p0 = scmp.lt.u32.totalorder %s75_s23, %s126_s1 }
  0x1f   :  { %p81_p1 = pnand %p79_p0, %p76_p13 }
  0x21   :  { %84 = shalt.err (!%p81_p1)
}
  0x22   :  { %33 = dma.vmem_to_hbm [thread:$0]  %s31_s19, 32, %s126_s1, [#allocation4]  }
  0x23   :  { %87 = dma.done.wait [#allocation4], 32  }
  0x24   :  { %88 = vsyncadd [#allocation4], 4294967264 }
  0x25   :  { %37 = vsyncpa [#allocation3], 1 }
  0x26   :  { %38 = vsyncpa [#allocation4], 1 }

</bundles_post_ra>
